<compile_context>
chip_gen: v5e
topology: v5e:2x2
jax: 0.10.0
libtpu: 0.0.40
codegen_flags: <defaults>
</compile_context>

<pallas_src>
import jax
import jax.numpy as jnp
from jax.experimental import pallas as pl
from jax.experimental.pallas import tpu as pltpu


def _mapminmax_kernel(x_ref, xoff_ref, gain_ref, o_ref):
    # Pure VPU elementwise hot path: (x - xoffset) * gain + ymin.
    ymin = jnp.float32(-1.0)
    y = (x_ref[...] - xoff_ref[...]) * gain_ref[...] + ymin
    o_ref[...] = y.astype(o_ref.dtype)


def _round_up(x, m):
    return ((x + m - 1) // m) * m


def _cdiv(a, b):
    return -(-a // b)


def mapminmax_forward(x, xoffset, gain):
    """x: (B, size); xoffset, gain: (size,). Returns (x - xoffset)*gain - 1."""
    B, size = x.shape
    dtype = x.dtype
    itemsize = jnp.dtype(dtype).itemsize

    xoff2d = xoffset.reshape(1, size).astype(dtype)
    gain2d = gain.reshape(1, size).astype(dtype)

    # ---------------- Small-problem fast path: one block, no pipelining. ----
    if B * size * itemsize <= (2 << 20):
        return pl.pallas_call(
            _mapminmax_kernel,
            out_shape=jax.ShapeDtypeStruct((B, size), dtype),
            grid=(1,),
            in_specs=[
                pl.BlockSpec((B, size), lambda i: (0, 0)),
                pl.BlockSpec((1, size), lambda i: (0, 0)),
                pl.BlockSpec((1, size), lambda i: (0, 0)),
            ],
            out_specs=pl.BlockSpec((B, size), lambda i: (0, 0)),
        )(x, xoff2d, gain2d)

    # ---------------- Large-problem streaming path: big lane-dense blocks. --
    # Per-block byte budget for the x block (y block is the same size).
    # Double-buffered x + y at 2 MiB each -> ~8 MiB of VMEM: comfortable on
    # v5e (~16 MiB default scoped), v6e and v7x.
    block_bytes = 2 << 20

    # Feature (lane) tile: take the full feature dim when modest (always a
    # legal block dim), otherwise a large multiple of 128 (unmasked vst).
    if size <= 4096:
        tile_s = size
        size_pad = size
    else:
        tile_s = 2048
        size_pad = _round_up(size, tile_s)

    # Batch (sublane) tile: as many rows as fit the block budget (multiple of
    # 8), then shrunk to the smallest tile giving the same grid-step count to
    # minimize padding waste. Keep >=2 batch steps when possible so both v7x
    # TensorCores get work along the parallel axis.
    rows_budget = max(8, (block_bytes // (tile_s * itemsize)) // 8 * 8)
    n_b = max(1, _cdiv(B, rows_budget))
    if n_b == 1 and B > 8:
        n_b = 2
    tile_b = _round_up(_cdiv(B, n_b), 8)
    b_pad = n_b * tile_b

    xp = x
    if b_pad != B or size_pad != size:
        xp = jnp.pad(x, ((0, b_pad - B), (0, size_pad - size)))
    if size_pad != size:
        xoff2d = jnp.pad(xoff2d, ((0, 0), (0, size_pad - size)))
        gain2d = jnp.pad(gain2d, ((0, 0), (0, size_pad - size)))

    grid = (n_b, size_pad // tile_s)
    out = pl.pallas_call(
        _mapminmax_kernel,
        out_shape=jax.ShapeDtypeStruct((b_pad, size_pad), dtype),
        grid=grid,
        in_specs=[
            pl.BlockSpec((tile_b, tile_s), lambda i, j: (i, j)),
            pl.BlockSpec((1, tile_s), lambda i, j: (0, j)),
            pl.BlockSpec((1, tile_s), lambda i, j: (0, j)),
        ],
        out_specs=pl.BlockSpec((tile_b, tile_s), lambda i, j: (i, j)),
        compiler_params=pltpu.CompilerParams(
            dimension_semantics=("parallel", "parallel"),
        ),
    )(xp, xoff2d, gain2d)

    if b_pad != B or size_pad != size:
        out = out[:B, :size]
    return out


if __name__ == "__main__":
    key = jax.random.PRNGKey(0)
    k_x, k_off, k_gain, k_x2 = jax.random.split(key, 4)

    # Small shapes consistent with the module: batch=8, size=128.
    batch, size = 8, 128
    xoffset = jax.random.normal(k_off, (size,), dtype=jnp.float32)
    gain = jax.random.normal(k_gain, (size,), dtype=jnp.float32)
    x = jax.random.normal(k_x, (batch, size), dtype=jnp.float32)

    y = jax.block_until_ready(mapminmax_forward(x, xoffset, gain))
    y_ref = (x - xoffset[None, :]) * gain[None, :] + (-1.0)
    assert y.shape == (batch, size)
    assert jnp.allclose(y, y_ref, atol=1e-6, rtol=1e-6)

    # Also exercise the large-block streaming path with a ragged batch size
    # (not a multiple of the chosen tile) to validate the padding logic.
    B2, S2 = 1000, 768
    x2 = jax.random.normal(k_x2, (B2, S2), dtype=jnp.float32)
    xoff2 = jax.random.normal(k_off, (S2,), dtype=jnp.float32)
    gain2 = jax.random.normal(k_gain, (S2,), dtype=jnp.float32)
    y2 = jax.block_until_ready(mapminmax_forward(x2, xoff2, gain2))
    y2_ref = (x2 - xoff2[None, :]) * gain2[None, :] + (-1.0)
    assert y2.shape == (B2, S2)
    assert jnp.allclose(y2, y2_ref, atol=1e-6, rtol=1e-6)

    print("KERNEL_OK")
</pallas_src>

<mosaic_0001>
module attributes {stable_mosaic.version = 11 : i64} {
  func.func @_mapminmax_kernel(%arg0: i32, %arg1: memref<8x128xf32, #tpu.memory_space<vmem>>, %arg2: memref<1x128xf32, #tpu.memory_space<vmem>>, %arg3: memref<1x128xf32, #tpu.memory_space<vmem>>, %arg4: memref<8x128xf32, #tpu.memory_space<vmem>>) attributes {dimension_semantics = [#tpu.dimension_semantics<arbitrary>], iteration_bounds = array<i64: 1>, scalar_prefetch = 0 : i64, scratch_operands = 0 : i64, tpu.core_type = #tpu.core_type<tc>, window_params = [{pipeline_mode = #tpu.pipeline_mode<synchronous>, transform_indices = @transform_0, window_bounds = array<i64: 8, 128>}, {pipeline_mode = #tpu.pipeline_mode<synchronous>, transform_indices = @transform_1, window_bounds = array<i64: 1, 128>}, {pipeline_mode = #tpu.pipeline_mode<synchronous>, transform_indices = @transform_2, window_bounds = array<i64: 1, 128>}, {pipeline_mode = #tpu.pipeline_mode<synchronous>, transform_indices = @transform_3, window_bounds = array<i64: 8, 128>}]} {
    %c0 = arith.constant 0 : index
    %c0_0 = arith.constant 0 : index
    %0 = vector.load %arg1[%c0, %c0_0] : memref<8x128xf32, #tpu.memory_space<vmem>>, vector<8x128xf32>
    %c0_1 = arith.constant 0 : index
    %c0_2 = arith.constant 0 : index
    %1 = vector.load %arg2[%c0_1, %c0_2] : memref<1x128xf32, #tpu.memory_space<vmem>>, vector<1x128xf32>
    %2 = vector.broadcast %1 : vector<1x128xf32> to vector<8x128xf32>
    %3 = arith.subf %0, %2 : vector<8x128xf32>
    %c0_3 = arith.constant 0 : index
    %c0_4 = arith.constant 0 : index
    %4 = vector.load %arg3[%c0_3, %c0_4] : memref<1x128xf32, #tpu.memory_space<vmem>>, vector<1x128xf32>
    %5 = vector.broadcast %4 : vector<1x128xf32> to vector<8x128xf32>
    %6 = arith.mulf %3, %5 : vector<8x128xf32>
    %cst = arith.constant -1.000000e+00 : f32
    %7 = vector.broadcast %cst : f32 to vector<8x128xf32>
    %8 = arith.addf %6, %7 : vector<8x128xf32>
    %c0_5 = arith.constant 0 : index
    %c0_6 = arith.constant 0 : index
    %9 = vector.load %arg4[%c0_5, %c0_6] : memref<8x128xf32, #tpu.memory_space<vmem>>, vector<8x128xf32>
    tpu.vector_store %arg4[%c0_5, %c0_6], %8 {strides = array<i32>} : memref<8x128xf32, #tpu.memory_space<vmem>>, vector<8x128xf32>,
    return
  }
  func.func @transform_0(%arg0: i32) -> (i32, i32) {
    %c0_i32 = arith.constant 0 : i32
    %c0_i32_0 = arith.constant 0 : i32
    %c0_i32_1 = arith.constant 0 : i32
    return %c0_i32, %c0_i32_0 : i32, i32
  }
  func.func @transform_1(%arg0: i32) -> (i32, i32) {
    %c0_i32 = arith.constant 0 : i32
    %c0_i32_0 = arith.constant 0 : i32
    %c0_i32_1 = arith.constant 0 : i32
    return %c0_i32, %c0_i32_0 : i32, i32
  }
  func.func @transform_2(%arg0: i32) -> (i32, i32) {
    %c0_i32 = arith.constant 0 : i32
    %c0_i32_0 = arith.constant 0 : i32
    %c0_i32_1 = arith.constant 0 : i32
    return %c0_i32, %c0_i32_0 : i32, i32
  }
  func.func @transform_3(%arg0: i32) -> (i32, i32) {
    %c0_i32 = arith.constant 0 : i32
    %c0_i32_0 = arith.constant 0 : i32
    %c0_i32_1 = arith.constant 0 : i32
    return %c0_i32, %c0_i32_0 : i32, i32
  }
}

</mosaic_0001>

<bundles_post_ra>
// kernel: tpu_custom_call.1
= control target key start
LH: loop header
LB: loop body
LE: loop exit
PB: predicated region body
PF: predicated region fallthrough
CT: control target
= control target key end

     0   :  { %8 = vsyncpa [#allocation3], 0  ;;  %s192_s0 = inlined_call_operand.hbm [shape: f32[8,128], index: 0, kind: input, shape index: {}]   ;;  %s193_s1 = inlined_call_operand.hbm [shape: f32[1,128], index: 1, kind: input, shape index: {}]   ;;  %s194_s2 = inlined_call_operand.vmem [shape: f32[1,128], index: 2, kind: input, shape index: {}]   ;;  %s195_s3 = inlined_call_operand.hbm [shape: f32[8,128], index: 3, kind: output, shape index: {}]  }
   0x1   :  { %9 = vsyncpa [#allocation6], 0 }
   0x2   :  { %10 = vsyncpa [#allocation4], 0  ;;  %s16_s14 = sshll.u32 %s192_s0, 4  ;;  %s157_s15 = smov [#allocation2]   ;;  %s17_s14 = int_to_ptr.hbm [resolvable:$true] %s16_s14 }
   0x3   :  { %s18_s16 = sshll.u32 %s157_s15, 4  ;;  %s27_s19 = sshll.u32 %s193_s1, 4  ;;  %s19_s16 = int_to_ptr.vmem [resolvable:$true] %s18_s16  ;;  %s28_s19 = int_to_ptr.hbm [resolvable:$true] %s27_s19 }
   0x4   :  { %21 = dma.hbm_to_vmem [thread:$0]  %s17_s14, 128, %s19_s16, [#allocation3]  }
   0x5   :  { %s158_s20 = smov [#allocation5]  }
   0x6   :  { %s29_s21 = sshll.u32 %s158_s20, 4  ;;  %s30_s21 = int_to_ptr.vmem [resolvable:$true] %s29_s21 }
   0x7   :  { %32 = dma.hbm_to_vmem [thread:$0]  %s28_s19, 16, %s30_s21, [#allocation6]  }
   0x8   :  { %151 = dma.done.wait [#allocation3], 128  }
   0x9   :  { %152 = vsyncadd [#allocation3], 4294967168 }
   0xa   :  { %153 = dma.done.wait [#allocation6], 16  }
   0xb   :  { %154 = vsyncadd [#allocation6], 4294967280  ;;  %v43_v0 = vld [vmem:[#allocation2] sm:$0xff]  ;;  %v77_v1 = vld [vmem:[#allocation5] ss:$0 sm:$0xff]  ;;  %s159_s23 = smov [#allocation7]  }
   0xc   :  { %v78_v2 = vld [vmem:[%s194_s2] ss:$0 sm:$0xff]  ;;  %v48_v3 = vsub.f32 %v43_v0, %v77_v1  ;;  %s61_s24 = sshll.u32 %s159_s23, 4  ;;  %s63_s26 = sshll.u32 %s195_s3, 4  ;;  %s62_s24 = int_to_ptr.vmem [resolvable:$true] %s61_s24  ;;  %s64_s26 = int_to_ptr.hbm [resolvable:$true] %s63_s26 }
   0xe   :  { %v53_v4 = vmul.f32 %v78_v2, %v48_v3 }
  0x10   :  { %v54_v5 = vadd.f32 -1.0, %v53_v4 }
  0x12   :  { %55 = vst [vmem:[#allocation7] sm:$0xff] %v54_v5 }
  0x13   :  { %66 = dma.vmem_to_hbm [thread:$0]  %s62_s24, 128, %s64_s26, [#allocation4]  }
  0x14   :  { %155 = dma.done.wait [#allocation4], 128  }
  0x15   :  { %156 = vsyncadd [#allocation4], 4294967168 }
  0x16   :  { %71 = vsyncpa [#allocation3], 1 }
  0x17   :  { %72 = vsyncpa [#allocation6], 1 }
  0x18   :  { %73 = vsyncpa [#allocation4], 1 }

</bundles_post_ra>
